<compile_context>
chip_gen: v5e
topology: v5e:2x2
jax: 0.10.0
libtpu: 0.0.40
codegen_flags: <defaults>
</compile_context>

<pallas_src>
import jax
import jax.numpy as jnp
from jax.experimental import pallas as pl
from jax.experimental.pallas import tpu as pltpu


def _round_up(x: int, m: int) -> int:
    return ((x + m - 1) // m) * m


def _vmem_limit_bytes(default=48 * 1024 * 1024) -> int:
    """Per-generation VMEM budget: ~80% of capacity, capped at capacity-8MiB.
    -> ~51 MiB on v7x (64 MiB/TC), ~102 MiB on v5e/v6e (128 MiB)."""
    try:
        info = pltpu.get_tpu_info()
        cap = getattr(info, "vmem_capacity_bytes", None)
        if not cap:
            return default
        return max(32 * 1024 * 1024,
                   min(int(cap * 0.8), int(cap) - 8 * 1024 * 1024))
    except Exception:
        return default


def mlp_kernel(x_ref, w1_ref, b1_ref, w2_ref, b2_ref, o_ref):
    # (TB, D_in) @ (D_in, H_pad) -> (TB, H_pad), f32 MXU accumulation.
    h = jnp.dot(x_ref[...], w1_ref[...], preferred_element_type=jnp.float32)
    h = jnp.maximum(h + b1_ref[...], 0.0)            # bias + ReLU on the VPU
    # (TB, H_pad) @ (H_pad, O_pad) -> (TB, O_pad)
    out = jnp.dot(h, w2_ref[...], preferred_element_type=jnp.float32)
    o_ref[...] = (out + b2_ref[...]).astype(o_ref.dtype)


def prepare_params(w1, b1, w2, b2, *, dtype=jnp.float32):
    """One-time parameter prep (call at init, reuse for every forward).

    Pads hidden (H) and output (O) dims up to multiples of 128 so the
    intermediate h, the bias/ReLU, and both matmuls run on full lanes and the
    output stores are unmasked.  Zero-padding is exact: padded h columns are
    relu(0 + 0) = 0 and padded W2 rows are 0, so they contribute nothing.
    For genuinely MXU-bound shapes, pass dtype=jnp.bfloat16 to pre-cast once
    (halves weight DMA + resident VMEM); the kernel still accumulates in f32.
    """
    D_in, H = w1.shape
    O = w2.shape[1]
    H_pad = _round_up(H, 128)
    O_pad = _round_up(O, 128)
    w1p = jnp.zeros((D_in, H_pad), dtype).at[:, :H].set(w1.astype(dtype))
    b1p = jnp.zeros((1, H_pad), dtype).at[:, :H].set(
        jnp.reshape(b1, (1, H)).astype(dtype))
    w2p = jnp.zeros((H_pad, O_pad), dtype).at[:H, :O].set(w2.astype(dtype))
    b2p = jnp.zeros((1, O_pad), dtype).at[:, :O].set(
        jnp.reshape(b2, (1, O)).astype(dtype))
    return {"w1": w1p, "b1": b1p, "w2": w2p, "b2": b2p, "out_dim": O}


def simple_classifier_forward(x, params, *, block_batch=512):
    """x: (B, D_in) f32; params: output of prepare_params."""
    w1p, b1p, w2p, b2p = params["w1"], params["b1"], params["w2"], params["b2"]
    O = params["out_dim"]
    B, D_in = x.shape
    assert w1p.shape[0] == D_in, (w1p.shape, D_in)
    H_pad = w1p.shape[1]
    O_pad = w2p.shape[1]

    vmem_limit = _vmem_limit_bytes()

    # ---- batch tile size ---------------------------------------------------
    TB = _round_up(min(block_batch, _round_up(B, 8)), 8)
    # Give v7x's second TensorCore work when the batch is big enough to split
    # ("parallel" batch axis shards across TCs; no-op on single-TC v5e/v6e).
    if B >= 16 and pl.cdiv(B, TB) < 2:
        TB = _round_up(pl.cdiv(B, 2), 8)
    # Shrink TB until resident weights + double-buffered x/out tiles + the h
    # intermediate fit the per-generation VMEM budget.
    itemsize = jnp.dtype(w1p.dtype).itemsize
    weight_bytes = (w1p.size + b1p.size + w2p.size + b2p.size) * itemsize

    def _tile_bytes(tb):
        return (2 * tb * D_in + 2 * tb * O_pad + tb * H_pad) * 4

    while TB > 8 and weight_bytes + _tile_bytes(TB) > int(0.9 * vmem_limit):
        TB = max(8, _round_up(TB // 2, 8))
    # TODO(synk): add a K-tiled (D_in grid axis + f32 VMEM accumulator) fallback
    # for configs where the resident weights alone exceed the VMEM budget.

    num_tiles = pl.cdiv(B, TB)

    def _run(single_buffer_weights):
        def resident(shape):
            # Constant block index -> loaded once, stays resident in VMEM.
            if single_buffer_weights:
                return pl.BlockSpec(shape, lambda i: (0, 0),
                                    pipeline_mode=pl.Buffered(1))
            return pl.BlockSpec(shape, lambda i: (0, 0))

        return pl.pallas_call(
            mlp_kernel,
            out_shape=jax.ShapeDtypeStruct((B, O_pad), x.dtype),
            grid=(num_tiles,),
            in_specs=[
                pl.BlockSpec((TB, D_in), lambda i: (i, 0)),  # streamed X tile
                resident((D_in, H_pad)),
                resident((1, H_pad)),
                resident((H_pad, O_pad)),
                resident((1, O_pad)),
            ],
            out_specs=pl.BlockSpec((TB, O_pad), lambda i: (i, 0)),
            compiler_params=pltpu.CompilerParams(
                dimension_semantics=("parallel",),
                vmem_limit_bytes=vmem_limit,
            ),
        )(x, w1p, b1p, w2p, b2p)

    try:
        out = _run(True)
    except Exception:
        # Fallback for Pallas versions without pipeline_mode / Buffered(1).
        out = _run(False)

    return out[:, :O]


if __name__ == "__main__":
    # Small shapes consistent with the module's forward.
    batch, input_dim, hidden_dim, output_dim = 8, 32, 64, 16

    key = jax.random.PRNGKey(0)
    kx, kw1, kb1, kw2, kb2 = jax.random.split(key, 5)

    x = jax.random.normal(kx, (batch, input_dim), dtype=jnp.float32)

    # Deterministic parameter init (stored as (in, out) so the kernel computes
    # X @ W + b, matching torch nn.Linear's x @ W.T + b).
    bound1 = 1.0 / float(jnp.sqrt(input_dim))
    w1 = jax.random.uniform(kw1, (input_dim, hidden_dim), jnp.float32, -bound1, bound1)
    b1 = jax.random.uniform(kb1, (hidden_dim,), jnp.float32, -bound1, bound1)
    bound2 = 1.0 / float(jnp.sqrt(hidden_dim))
    w2 = jax.random.uniform(kw2, (hidden_dim, output_dim), jnp.float32, -bound2, bound2)
    b2 = jax.random.uniform(kb2, (output_dim,), jnp.float32, -bound2, bound2)

    params = prepare_params(w1, b1, w2, b2)   # one-time padding, cached
    out = simple_classifier_forward(x, params)
    jax.block_until_ready(out)

    # Pure-JAX f32 reference (HIGHEST precision so the reference is true f32).
    hi = jax.lax.Precision.HIGHEST
    ref = jnp.maximum(jnp.dot(x, w1, precision=hi) + b1, 0.0)
    ref = jnp.dot(ref, w2, precision=hi) + b2

    assert out.shape == (batch, output_dim), out.shape
    max_err = float(jnp.max(jnp.abs(out - ref)))
    assert jnp.allclose(out, ref, atol=1e-3, rtol=1e-3), max_err

    print("KERNEL_OK")
</pallas_src>

<mosaic_0001>
module attributes {stable_mosaic.version = 11 : i64} {
  func.func @mlp_kernel(%arg0: i32, %arg1: memref<8x32xf32, #tpu.memory_space<vmem>>, %arg2: memref<32x128xf32, #tpu.memory_space<vmem>>, %arg3: memref<1x128xf32, #tpu.memory_space<vmem>>, %arg4: memref<128x128xf32, #tpu.memory_space<vmem>>, %arg5: memref<1x128xf32, #tpu.memory_space<vmem>>, %arg6: memref<8x128xf32, #tpu.memory_space<vmem>>) attributes {dimension_semantics = [#tpu.dimension_semantics<parallel>], iteration_bounds = array<i64: 1>, scalar_prefetch = 0 : i64, scratch_operands = 0 : i64, tpu.core_type = #tpu.core_type<tc>, window_params = [{transform_indices = @transform_0, window_bounds = array<i64: 8, 32>}, {pipeline_mode = #tpu.pipeline_mode<synchronous>, transform_indices = @transform_1, window_bounds = array<i64: 32, 128>}, {pipeline_mode = #tpu.pipeline_mode<synchronous>, transform_indices = @transform_2, window_bounds = array<i64: 1, 128>}, {pipeline_mode = #tpu.pipeline_mode<synchronous>, transform_indices = @transform_3, window_bounds = array<i64: 128, 128>}, {pipeline_mode = #tpu.pipeline_mode<synchronous>, transform_indices = @transform_4, window_bounds = array<i64: 1, 128>}, {transform_indices = @transform_5, window_bounds = array<i64: 8, 128>}]} {
    %c0 = arith.constant 0 : index
    %c0_0 = arith.constant 0 : index
    %0 = vector.load %arg1[%c0, %c0_0] : memref<8x32xf32, #tpu.memory_space<vmem>>, vector<8x32xf32>
    %c0_1 = arith.constant 0 : index
    %c0_2 = arith.constant 0 : index
    %1 = vector.load %arg2[%c0_1, %c0_2] : memref<32x128xf32, #tpu.memory_space<vmem>>, vector<32x128xf32>
    %cst = arith.constant dense<0.000000e+00> : vector<8x128xf32>
    %2 = tpu.matmul %0, %1, %cst {dimension_numbers = #tpu.dot_dimension_numbers<[1], [0], [0], [1], [0, 0, 1, 1], [], []>} : vector<8x32xf32>, vector<32x128xf32>, vector<8x128xf32> -> vector<8x128xf32>
    %c0_3 = arith.constant 0 : index
    %c0_4 = arith.constant 0 : index
    %3 = vector.load %arg3[%c0_3, %c0_4] : memref<1x128xf32, #tpu.memory_space<vmem>>, vector<1x128xf32>
    %4 = vector.broadcast %3 : vector<1x128xf32> to vector<8x128xf32>
    %5 = arith.addf %2, %4 : vector<8x128xf32>
    %cst_5 = arith.constant 0.000000e+00 : f32
    %6 = vector.broadcast %cst_5 : f32 to vector<8x128xf32>
    %7 = arith.maximumf %5, %6 : vector<8x128xf32>
    %c0_6 = arith.constant 0 : index
    %c0_7 = arith.constant 0 : index
    %8 = vector.load %arg4[%c0_6, %c0_7] : memref<128x128xf32, #tpu.memory_space<vmem>>, vector<128x128xf32>
    %cst_8 = arith.constant dense<0.000000e+00> : vector<8x128xf32>
    %9 = tpu.matmul %7, %8, %cst_8 {dimension_numbers = #tpu.dot_dimension_numbers<[1], [0], [0], [1], [0, 0, 1, 1], [], []>} : vector<8x128xf32>, vector<128x128xf32>, vector<8x128xf32> -> vector<8x128xf32>
    %c0_9 = arith.constant 0 : index
    %c0_10 = arith.constant 0 : index
    %10 = vector.load %arg5[%c0_9, %c0_10] : memref<1x128xf32, #tpu.memory_space<vmem>>, vector<1x128xf32>
    %11 = vector.broadcast %10 : vector<1x128xf32> to vector<8x128xf32>
    %12 = arith.addf %9, %11 : vector<8x128xf32>
    %c0_11 = arith.constant 0 : index
    %c0_12 = arith.constant 0 : index
    %13 = vector.load %arg6[%c0_11, %c0_12] : memref<8x128xf32, #tpu.memory_space<vmem>>, vector<8x128xf32>
    tpu.vector_store %arg6[%c0_11, %c0_12], %12 {strides = array<i32>} : memref<8x128xf32, #tpu.memory_space<vmem>>, vector<8x128xf32>,
    return
  }
  func.func @transform_0(%arg0: i32) -> (i32, i32) {
    %c0_i32 = arith.constant 0 : i32
    %c0_i32_0 = arith.constant 0 : i32
    return %arg0, %c0_i32 : i32, i32
  }
  func.func @transform_1(%arg0: i32) -> (i32, i32) {
    %c0_i32 = arith.constant 0 : i32
    %c0_i32_0 = arith.constant 0 : i32
    %c0_i32_1 = arith.constant 0 : i32
    return %c0_i32, %c0_i32_0 : i32, i32
  }
  func.func @transform_2(%arg0: i32) -> (i32, i32) {
    %c0_i32 = arith.constant 0 : i32
    %c0_i32_0 = arith.constant 0 : i32
    %c0_i32_1 = arith.constant 0 : i32
    return %c0_i32, %c0_i32_0 : i32, i32
  }
  func.func @transform_3(%arg0: i32) -> (i32, i32) {
    %c0_i32 = arith.constant 0 : i32
    %c0_i32_0 = arith.constant 0 : i32
    %c0_i32_1 = arith.constant 0 : i32
    return %c0_i32, %c0_i32_0 : i32, i32
  }
  func.func @transform_4(%arg0: i32) -> (i32, i32) {
    %c0_i32 = arith.constant 0 : i32
    %c0_i32_0 = arith.constant 0 : i32
    %c0_i32_1 = arith.constant 0 : i32
    return %c0_i32, %c0_i32_0 : i32, i32
  }
  func.func @transform_5(%arg0: i32) -> (i32, i32) {
    %c0_i32 = arith.constant 0 : i32
    %c0_i32_0 = arith.constant 0 : i32
    return %arg0, %c0_i32 : i32, i32
  }
}

module attributes {stable_mosaic.version = 11 : i64} {
  func.func @mlp_kernel(%arg0: i32, %arg1: memref<8x32xf32, #tpu.memory_space<vmem>>, %arg2: memref<32x128xf32, #tpu.memory_space<vmem>>, %arg3: memref<1x128xf32, #tpu.memory_space<vmem>>, %arg4: memref<128x128xf32, #tpu.memory_space<vmem>>, %arg5: memref<1x128xf32, #tpu.memory_space<vmem>>, %arg6: memref<8x128xf32, #tpu.memory_space<vmem>>) attributes {dimension_semantics = [#tpu.dimension_semantics<parallel>], iteration_bounds = array<i64: 1>, scalar_prefetch = 0 : i64, scratch_operands = 0 : i64, tpu.core_type = #tpu.core_type<tc>, window_params = [{transform_indices = @transform_0, window_bounds = array<i64: 8, 32>}, {pipeline_mode = #tpu.pipeline_mode<synchronous>, transform_indices = @transform_1, window_bounds = array<i64: 32, 128>}, {pipeline_mode = #tpu.pipeline_mode<synchronous>, transform_indices = @transform_2, window_bounds = array<i64: 1, 128>}, {pipeline_mode = #tpu.pipeline_mode<synchronous>, transform_indices = @transform_3, window_bounds = array<i64: 128, 128>}, {pipeline_mode = #tpu.pipeline_mode<synchronous>, transform_indices = @transform_4, window_bounds = array<i64: 1, 128>}, {transform_indices = @transform_5, window_bounds = array<i64: 8, 128>}]} {
    %c0 = arith.constant 0 : index
    %c0_0 = arith.constant 0 : index
    %0 = vector.load %arg1[%c0, %c0_0] : memref<8x32xf32, #tpu.memory_space<vmem>>, vector<8x32xf32>
    %c0_1 = arith.constant 0 : index
    %c0_2 = arith.constant 0 : index
    %1 = vector.load %arg2[%c0_1, %c0_2] : memref<32x128xf32, #tpu.memory_space<vmem>>, vector<32x128xf32>
    %cst = arith.constant dense<0.000000e+00> : vector<8x128xf32>
    %2 = tpu.matmul %0, %1, %cst {dimension_numbers = #tpu.dot_dimension_numbers<[1], [0], [0], [1], [0, 0, 1, 1], [], []>} : vector<8x32xf32>, vector<32x128xf32>, vector<8x128xf32> -> vector<8x128xf32>
    %c0_3 = arith.constant 0 : index
    %c0_4 = arith.constant 0 : index
    %3 = vector.load %arg3[%c0_3, %c0_4] : memref<1x128xf32, #tpu.memory_space<vmem>>, vector<1x128xf32>
    %4 = vector.broadcast %3 : vector<1x128xf32> to vector<8x128xf32>
    %5 = arith.addf %2, %4 : vector<8x128xf32>
    %cst_5 = arith.constant 0.000000e+00 : f32
    %6 = vector.broadcast %cst_5 : f32 to vector<8x128xf32>
    %7 = arith.maximumf %5, %6 : vector<8x128xf32>
    %c0_6 = arith.constant 0 : index
    %c0_7 = arith.constant 0 : index
    %8 = vector.load %arg4[%c0_6, %c0_7] : memref<128x128xf32, #tpu.memory_space<vmem>>, vector<128x128xf32>
    %cst_8 = arith.constant dense<0.000000e+00> : vector<8x128xf32>
    %9 = tpu.matmul %7, %8, %cst_8 {dimension_numbers = #tpu.dot_dimension_numbers<[1], [0], [0], [1], [0, 0, 1, 1], [], []>} : vector<8x128xf32>, vector<128x128xf32>, vector<8x128xf32> -> vector<8x128xf32>
    %c0_9 = arith.constant 0 : index
    %c0_10 = arith.constant 0 : index
    %10 = vector.load %arg5[%c0_9, %c0_10] : memref<1x128xf32, #tpu.memory_space<vmem>>, vector<1x128xf32>
    %11 = vector.broadcast %10 : vector<1x128xf32> to vector<8x128xf32>
    %12 = arith.addf %9, %11 : vector<8x128xf32>
    %c0_11 = arith.constant 0 : index
    %c0_12 = arith.constant 0 : index
    %13 = vector.load %arg6[%c0_11, %c0_12] : memref<8x128xf32, #tpu.memory_space<vmem>>, vector<8x128xf32>
    tpu.vector_store %arg6[%c0_11, %c0_12], %12 {strides = array<i32>} : memref<8x128xf32, #tpu.memory_space<vmem>>, vector<8x128xf32>,
    return
  }
  func.func @transform_0(%arg0: i32) -> (i32, i32) {
    %c0_i32 = arith.constant 0 : i32
    %c0_i32_0 = arith.constant 0 : i32
    return %arg0, %c0_i32 : i32, i32
  }
  func.func @transform_1(%arg0: i32) -> (i32, i32) {
    %c0_i32 = arith.constant 0 : i32
    %c0_i32_0 = arith.constant 0 : i32
    %c0_i32_1 = arith.constant 0 : i32
    return %c0_i32, %c0_i32_0 : i32, i32
  }
  func.func @transform_2(%arg0: i32) -> (i32, i32) {
    %c0_i32 = arith.constant 0 : i32
    %c0_i32_0 = arith.constant 0 : i32
    %c0_i32_1 = arith.constant 0 : i32
    return %c0_i32, %c0_i32_0 : i32, i32
  }
  func.func @transform_3(%arg0: i32) -> (i32, i32) {
    %c0_i32 = arith.constant 0 : i32
    %c0_i32_0 = arith.constant 0 : i32
    %c0_i32_1 = arith.constant 0 : i32
    return %c0_i32, %c0_i32_0 : i32, i32
  }
  func.func @transform_4(%arg0: i32) -> (i32, i32) {
    %c0_i32 = arith.constant 0 : i32
    %c0_i32_0 = arith.constant 0 : i32
    %c0_i32_1 = arith.constant 0 : i32
    return %c0_i32, %c0_i32_0 : i32, i32
  }
  func.func @transform_5(%arg0: i32) -> (i32, i32) {
    %c0_i32 = arith.constant 0 : i32
    %c0_i32_0 = arith.constant 0 : i32
    return %arg0, %c0_i32 : i32, i32
  }
}

</mosaic_0001>

<bundles_post_ra>
// kernel: tpu_custom_call.1
= control target key start
LH: loop header
LB: loop body
LE: loop exit
PB: predicated region body
PF: predicated region fallthrough
CT: control target
= control target key end

     0   :  { %10 = vsyncpa [#allocation3], 0  ;;  %s324_s0 = inlined_call_operand.hbm [shape: f32[8,32], index: 0, kind: input, shape index: {}]   ;;  %s325_s1 = inlined_call_operand.hbm [shape: f32[32,128], index: 1, kind: input, shape index: {}]   ;;  %s326_s2 = inlined_call_operand.vmem [shape: f32[1,128], index: 2, kind: input, shape index: {}]   ;;  %s327_s3 = inlined_call_operand.hbm [shape: f32[128,128], index: 3, kind: input, shape index: {}]   ;;  %s328_s4 = inlined_call_operand.vmem [shape: f32[1,128], index: 4, kind: input, shape index: {}]   ;;  %s329_s5 = inlined_call_operand.hbm [shape: f32[8,128], index: 5, kind: output, shape index: {}]  }
   0x1   :  { %11 = vsyncpa [#allocation6], 0  ;;  %s28_s20 = sshll.u32 %s325_s1, 4  ;;  %s29_s20 = int_to_ptr.hbm [resolvable:$true] %s28_s20 }
   0x2   :  { %12 = vsyncpa [#allocation4], 0  ;;  %s270_s21 = smov [#allocation5]   ;;  %s18_s25 = sshll.u32 %s324_s0, 4  ;;  %s19_s25 = int_to_ptr.hbm [resolvable:$true] %s18_s25 }
   0x3   :  { %s30_s22 = sshll.u32 %s270_s21, 4  ;;  %s271_s26 = smov 128   ;;  %s31_s22 = int_to_ptr.vmem [resolvable:$true] %s30_s22 }
   0x4   :  { %s272_s27 = smov 8   ;;  %s273_s28 = smov [#allocation2]  }
   0x5   :  { %36 = dma.hbm_to_vmem [thread:$0]  %s29_s20, 512, %s31_s22, [#allocation6], %s271_s26, %s271_s26, %s272_s27  }
   0x6   :  { %s20_s29 = sshll.u32 %s273_s28, 4  ;;  %s43_s7 = sshll.u32 %s327_s3, 4  ;;  %s21_s29 = int_to_ptr.vmem [resolvable:$true] %s20_s29  ;;  %s44_s7 = int_to_ptr.hbm [resolvable:$true] %s43_s7 }
   0x7   :  { %23 = dma.hbm_to_vmem [thread:$0]  %s19_s25, 128, %s21_s29, [#allocation3]  }
   0x8   :  { %s274_s1 = smov [#allocation7]  }
   0x9   :  { %s45_s8 = sshll.u32 %s274_s1, 4  ;;  %s46_s8 = int_to_ptr.vmem [resolvable:$true] %s45_s8 }
   0xa   :  { %51 = dma.hbm_to_vmem [thread:$0]  %s44_s7, 2048, %s46_s8, [#allocation6], %s271_s26, %s271_s26, %s272_s27  }
   0xb   :  { %264 = dma.done.wait [#allocation3], 128  }
   0xc   :  { %265 = vsyncadd [#allocation3], 4294967168 }
   0xd   :  { %266 = dma.done.wait [#allocation6], 2560  }
   0xe   :  { %267 = vsyncadd [#allocation6], 4294964736  ;;  %v70_v0 = vld [vmem:[#allocation5 + $0x18] sm:$0xff]  ;;  %v69_v1 = vld [vmem:[#allocation5 + $0x10] sm:$0xff]  ;;  %vm75_vm0 = vcmask 261120   ;;  %s275_s11 = smov [#allocation8]  }
   0xf   :  { %91 = vmatpush.msra.mxu0 %v70_v0  ;;  %v115_v2 = vld [vmem:[#allocation7 + $0x78] sm:$0xff]  ;;  %v68_v3 = vld [vmem:[#allocation5 + $0x8] sm:$0xff]  ;;  %v114_v4 = vld [vmem:[#allocation7 + $0x70] sm:$0xff]  ;;  %s146_s12 = sshll.u32 %s275_s11, 4  ;;  %s148_s15 = sshll.u32 %s329_s5, 4  ;;  %s147_s12 = int_to_ptr.vmem [resolvable:$true] %s146_s12  ;;  %s149_s15 = int_to_ptr.hbm [resolvable:$true] %s148_s15 }
  0x10   :  { %120 = vmatpush.msra.mxu1 %v115_v2  ;;  %v113_v5 = vld [vmem:[#allocation7 + $0x68] sm:$0xff]  ;;  %v67_v6 = vld [vmem:[#allocation5] sm:$0xff]  ;;  %v66_v7 = vld [vmem:[#allocation2] sm:$0xff] }
  0x11   :  { %92 = vmatpush.msra.mxu0 %v69_v1  ;;  %v112_v8 = vld [vmem:[#allocation7 + $0x60] sm:$0xff]  ;;  %v111_v9 = vld [vmem:[#allocation7 + $0x58] sm:$0xff]  ;;  %v110_v10 = vld [vmem:[#allocation7 + $0x50] sm:$0xff] }
  0x12   :  { %121 = vmatpush.msra.mxu1 %v114_v4  ;;  %v109_v11 = vld [vmem:[#allocation7 + $0x48] sm:$0xff]  ;;  %v108_v12 = vld [vmem:[#allocation7 + $0x40] sm:$0xff]  ;;  %v107_v13 = vld [vmem:[#allocation7 + $0x38] sm:$0xff] }
  0x13   :  { %93 = vmatpush.msra.mxu0 %v68_v3  ;;  %v106_v14 = vld [vmem:[#allocation7 + $0x30] sm:$0xff]  ;;  %v105_v15 = vld [vmem:[#allocation7 + $0x28] sm:$0xff]  ;;  %v104_v16 = vld [vmem:[#allocation7 + $0x20] sm:$0xff] }
  0x14   :  { %122 = vmatpush.msra.mxu1 %v113_v5  ;;  %v103_v17 = vld [vmem:[#allocation7 + $0x18] sm:$0xff]  ;;  %v102_v18 = vld [vmem:[#allocation7 + $0x10] sm:$0xff]  ;;  %v101_v19 = vld [vmem:[#allocation7 + $0x8] sm:$0xff] }
  0x15   :  { %94 = vmatpush.msra.mxu0 %v67_v6  ;;  %v100_v20 = vld [vmem:[#allocation7] sm:$0xff]  ;;  %v166_v21 = vld [vmem:[%s326_s2] ss:$0 sm:$0xff] }
  0x16   :  { %159 = vmatmul.msk.f32.vlgmr.msra.gmra.mxu0 %vm75_vm0, %v66_v7  ;;  %123 = vmatpush.msra.mxu1 %v112_v8  ;;  %v167_v25 = vld [vmem:[%s328_s4] ss:$0 sm:$0xff] }
  0x18   :  { %124 = vmatpush.msra.mxu1 %v111_v9 }
  0x1a   :  { %125 = vmatpush.msra.mxu1 %v110_v10 }
  0x1c   :  { %126 = vmatpush.msra.mxu1 %v109_v11 }
  0x1e   :  { %127 = vmatpush.msra.mxu1 %v108_v12 }
  0x20   :  { %128 = vmatpush.msra.mxu1 %v107_v13 }
  0x22   :  { %129 = vmatpush.msra.mxu1 %v106_v14 }
  0x24   :  { %130 = vmatpush.msra.mxu1 %v105_v15 }
  0x26   :  { %131 = vmatpush.msra.mxu1 %v104_v16 }
  0x28   :  { %132 = vmatpush.msra.mxu1 %v103_v17 }
  0x2a   :  { %133 = vmatpush.msra.mxu1 %v102_v18 }
  0x2c   :  { %134 = vmatpush.msra.mxu1 %v101_v19 }
  0x2e   :  { %135 = vmatpush.msra.mxu1 %v100_v20 }
  0x93   :  { %v96_v22 = vpop.f32.mrf.mxu0 }
  0x94   :  { %v97_v23 = vadd.f32 %v166_v21, %v96_v22 }
  0x96   :  { %v99_v24 = vmax.f32 %v97_v23, 0.0 }
  0x98   :  { %136 = vmatmul.f32.vlgmr.msra.gmra.mxu1 %v99_v24 }
 0x115   :  { %v137_v26 = vpop.f32.mrf.mxu1 }
 0x116   :  { %v138_v27 = vadd.f32 %v167_v25, %v137_v26 }
 0x118   :  { %140 = vst [vmem:[#allocation8] sm:$0xff] %v138_v27 }
 0x119   :  { %151 = dma.vmem_to_hbm [thread:$0]  %s147_s12, 128, %s149_s15, [#allocation4]  }
 0x11a   :  { %268 = dma.done.wait [#allocation4], 128  }
 0x11b   :  { %269 = vsyncadd [#allocation4], 4294967168 }
 0x11c   :  { %156 = vsyncpa [#allocation3], 1 }
 0x11d   :  { %157 = vsyncpa [#allocation6], 1 }
 0x11e   :  { %158 = vsyncpa [#allocation4], 1 }

// kernel: tpu_custom_call.1
= control target key start
LH: loop header
LB: loop body
LE: loop exit
PB: predicated region body
PF: predicated region fallthrough
CT: control target
= control target key end

     0   :  { %10 = vsyncpa [#allocation3], 0  ;;  %s324_s0 = inlined_call_operand.hbm [shape: f32[8,32], index: 0, kind: input, shape index: {}]   ;;  %s325_s1 = inlined_call_operand.hbm [shape: f32[32,128], index: 1, kind: input, shape index: {}]   ;;  %s326_s2 = inlined_call_operand.vmem [shape: f32[1,128], index: 2, kind: input, shape index: {}]   ;;  %s327_s3 = inlined_call_operand.hbm [shape: f32[128,128], index: 3, kind: input, shape index: {}]   ;;  %s328_s4 = inlined_call_operand.vmem [shape: f32[1,128], index: 4, kind: input, shape index: {}]   ;;  %s329_s5 = inlined_call_operand.hbm [shape: f32[8,128], index: 5, kind: output, shape index: {}]  }
   0x1   :  { %11 = vsyncpa [#allocation6], 0  ;;  %s28_s20 = sshll.u32 %s325_s1, 4  ;;  %s29_s20 = int_to_ptr.hbm [resolvable:$true] %s28_s20 }
   0x2   :  { %12 = vsyncpa [#allocation4], 0  ;;  %s270_s21 = smov [#allocation5]   ;;  %s18_s25 = sshll.u32 %s324_s0, 4  ;;  %s19_s25 = int_to_ptr.hbm [resolvable:$true] %s18_s25 }
   0x3   :  { %s30_s22 = sshll.u32 %s270_s21, 4  ;;  %s271_s26 = smov 128   ;;  %s31_s22 = int_to_ptr.vmem [resolvable:$true] %s30_s22 }
   0x4   :  { %s272_s27 = smov 8   ;;  %s273_s28 = smov [#allocation2]  }
   0x5   :  { %36 = dma.hbm_to_vmem [thread:$0]  %s29_s20, 512, %s31_s22, [#allocation6], %s271_s26, %s271_s26, %s272_s27  }
   0x6   :  { %s20_s29 = sshll.u32 %s273_s28, 4  ;;  %s43_s7 = sshll.u32 %s327_s3, 4  ;;  %s21_s29 = int_to_ptr.vmem [resolvable:$true] %s20_s29  ;;  %s44_s7 = int_to_ptr.hbm [resolvable:$true] %s43_s7 }
   0x7   :  { %23 = dma.hbm_to_vmem [thread:$0]  %s19_s25, 128, %s21_s29, [#allocation3]  }
   0x8   :  { %s274_s1 = smov [#allocation7]  }
   0x9   :  { %s45_s8 = sshll.u32 %s274_s1, 4  ;;  %s46_s8 = int_to_ptr.vmem [resolvable:$true] %s45_s8 }
   0xa   :  { %51 = dma.hbm_to_vmem [thread:$0]  %s44_s7, 2048, %s46_s8, [#allocation6], %s271_s26, %s271_s26, %s272_s27  }
   0xb   :  { %264 = dma.done.wait [#allocation3], 128  }
   0xc   :  { %265 = vsyncadd [#allocation3], 4294967168 }
   0xd   :  { %266 = dma.done.wait [#allocation6], 2560  }
   0xe   :  { %267 = vsyncadd [#allocation6], 4294964736  ;;  %v70_v0 = vld [vmem:[#allocation5 + $0x18] sm:$0xff]  ;;  %v69_v1 = vld [vmem:[#allocation5 + $0x10] sm:$0xff]  ;;  %vm75_vm0 = vcmask 261120   ;;  %s275_s11 = smov [#allocation8]  }
   0xf   :  { %91 = vmatpush.msra.mxu0 %v70_v0  ;;  %v115_v2 = vld [vmem:[#allocation7 + $0x78] sm:$0xff]  ;;  %v68_v3 = vld [vmem:[#allocation5 + $0x8] sm:$0xff]  ;;  %v114_v4 = vld [vmem:[#allocation7 + $0x70] sm:$0xff]  ;;  %s146_s12 = sshll.u32 %s275_s11, 4  ;;  %s148_s15 = sshll.u32 %s329_s5, 4  ;;  %s147_s12 = int_to_ptr.vmem [resolvable:$true] %s146_s12  ;;  %s149_s15 = int_to_ptr.hbm [resolvable:$true] %s148_s15 }
  0x10   :  { %120 = vmatpush.msra.mxu1 %v115_v2  ;;  %v113_v5 = vld [vmem:[#allocation7 + $0x68] sm:$0xff]  ;;  %v67_v6 = vld [vmem:[#allocation5] sm:$0xff]  ;;  %v66_v7 = vld [vmem:[#allocation2] sm:$0xff] }
  0x11   :  { %92 = vmatpush.msra.mxu0 %v69_v1  ;;  %v112_v8 = vld [vmem:[#allocation7 + $0x60] sm:$0xff]  ;;  %v111_v9 = vld [vmem:[#allocation7 + $0x58] sm:$0xff]  ;;  %v110_v10 = vld [vmem:[#allocation7 + $0x50] sm:$0xff] }
  0x12   :  { %121 = vmatpush.msra.mxu1 %v114_v4  ;;  %v109_v11 = vld [vmem:[#allocation7 + $0x48] sm:$0xff]  ;;  %v108_v12 = vld [vmem:[#allocation7 + $0x40] sm:$0xff]  ;;  %v107_v13 = vld [vmem:[#allocation7 + $0x38] sm:$0xff] }
  0x13   :  { %93 = vmatpush.msra.mxu0 %v68_v3  ;;  %v106_v14 = vld [vmem:[#allocation7 + $0x30] sm:$0xff]  ;;  %v105_v15 = vld [vmem:[#allocation7 + $0x28] sm:$0xff]  ;;  %v104_v16 = vld [vmem:[#allocation7 + $0x20] sm:$0xff] }
  0x14   :  { %122 = vmatpush.msra.mxu1 %v113_v5  ;;  %v103_v17 = vld [vmem:[#allocation7 + $0x18] sm:$0xff]  ;;  %v102_v18 = vld [vmem:[#allocation7 + $0x10] sm:$0xff]  ;;  %v101_v19 = vld [vmem:[#allocation7 + $0x8] sm:$0xff] }
  0x15   :  { %94 = vmatpush.msra.mxu0 %v67_v6  ;;  %v100_v20 = vld [vmem:[#allocation7] sm:$0xff]  ;;  %v166_v21 = vld [vmem:[%s326_s2] ss:$0 sm:$0xff] }
  0x16   :  { %159 = vmatmul.msk.f32.vlgmr.msra.gmra.mxu0 %vm75_vm0, %v66_v7  ;;  %123 = vmatpush.msra.mxu1 %v112_v8  ;;  %v167_v25 = vld [vmem:[%s328_s4] ss:$0 sm:$0xff] }
  0x18   :  { %124 = vmatpush.msra.mxu1 %v111_v9 }
  0x1a   :  { %125 = vmatpush.msra.mxu1 %v110_v10 }
  0x1c   :  { %126 = vmatpush.msra.mxu1 %v109_v11 }
  0x1e   :  { %127 = vmatpush.msra.mxu1 %v108_v12 }
  0x20   :  { %128 = vmatpush.msra.mxu1 %v107_v13 }
  0x22   :  { %129 = vmatpush.msra.mxu1 %v106_v14 }
  0x24   :  { %130 = vmatpush.msra.mxu1 %v105_v15 }
  0x26   :  { %131 = vmatpush.msra.mxu1 %v104_v16 }
  0x28   :  { %132 = vmatpush.msra.mxu1 %v103_v17 }
  0x2a   :  { %133 = vmatpush.msra.mxu1 %v102_v18 }
  0x2c   :  { %134 = vmatpush.msra.mxu1 %v101_v19 }
  0x2e   :  { %135 = vmatpush.msra.mxu1 %v100_v20 }
  0x93   :  { %v96_v22 = vpop.f32.mrf.mxu0 }
  0x94   :  { %v97_v23 = vadd.f32 %v166_v21, %v96_v22 }
  0x96   :  { %v99_v24 = vmax.f32 %v97_v23, 0.0 }
  0x98   :  { %136 = vmatmul.f32.vlgmr.msra.gmra.mxu1 %v99_v24 }
 0x115   :  { %v137_v26 = vpop.f32.mrf.mxu1 }
 0x116   :  { %v138_v27 = vadd.f32 %v167_v25, %v137_v26 }
 0x118   :  { %140 = vst [vmem:[#allocation8] sm:$0xff] %v138_v27 }
 0x119   :  { %151 = dma.vmem_to_hbm [thread:$0]  %s147_s12, 128, %s149_s15, [#allocation4]  }
 0x11a   :  { %268 = dma.done.wait [#allocation4], 128  }
 0x11b   :  { %269 = vsyncadd [#allocation4], 4294967168 }
 0x11c   :  { %156 = vsyncpa [#allocation3], 1 }
 0x11d   :  { %157 = vsyncpa [#allocation6], 1 }
 0x11e   :  { %158 = vsyncpa [#allocation4], 1 }

</bundles_post_ra>
